<compile_context>
chip_gen: v5e
topology: v5e:2x2
jax: 0.10.0
libtpu: 0.0.40
codegen_flags: <defaults>
</compile_context>

<pallas_src>
import inspect

import jax
import jax.numpy as jnp
import numpy as np
from jax.experimental import pallas as pl
from jax.experimental.pallas import tpu as pltpu


def _round_up(a, b):
    return (a + b - 1) // b * b


# ---------------------------------------------------------------------------
# Kernel
# ---------------------------------------------------------------------------
def _ffn_kernel(x_ref, w1_ref, b1_ref, w2_ref, b2_ref, o_ref, acc_ref):
    # x_ref:   (TM, Dp)  f32   (cast to bf16 in-kernel, hidden under MXU cycles)
    # w1_ref:  (Dp, TK)  bf16
    # b1_ref:  (1, TK)   f32
    # w2_ref:  (TK, Dp)  bf16
    # b2_ref:  (1, Dp)   f32
    # o_ref:   (TM, Dp)  out dtype
    # acc_ref: (TM, Dp)  f32 accumulator, resident across the d_ff (k) axis
    k = pl.program_id(1)

    @pl.when(k == 0)
    def _():
        acc_ref[...] = jnp.zeros_like(acc_ref)

    x_bf = x_ref[...].astype(jnp.bfloat16)
    # fc1 tile on the MXU (bf16 in, f32 accumulate); lean f32 epilogue (bias + ReLU).
    h = jnp.dot(x_bf, w1_ref[...], preferred_element_type=jnp.float32)
    h = jnp.maximum(h + b1_ref[...], 0.0)

    # fc2 partial product: single bf16 cast of the activation tile.
    acc_ref[...] += jnp.dot(h.astype(jnp.bfloat16), w2_ref[...],
                            preferred_element_type=jnp.float32)

    @pl.when(k == pl.num_programs(1) - 1)
    def _():
        o_ref[...] = (acc_ref[...] + b2_ref[...]).astype(o_ref.dtype)


# ---------------------------------------------------------------------------
# Hardware / API queries
# ---------------------------------------------------------------------------
def _tpu_info():
    kind = ""
    try:
        kind = jax.devices()[0].device_kind.lower()
    except Exception:
        pass
    vmem_cap = None
    try:
        vmem_cap = int(pltpu.get_tpu_info().vmem_capacity_bytes)
    except Exception:
        vmem_cap = None
    if not vmem_cap or vmem_cap <= 0:
        vmem_cap = (64 << 20) if "v7" in kind else (128 << 20)
    num_tc = 2 if "v7" in kind else 1
    return kind, vmem_cap, num_tc


def _supports_pipeline_mode():
    try:
        return hasattr(pl, "Buffered") and (
            "pipeline_mode" in inspect.signature(pl.BlockSpec).parameters)
    except Exception:
        return False


def _vmem_estimate(tm, tk, dp, out_isize, wbuf):
    BF16, F32 = 2, 4
    return (2 * tm * dp * F32            # x tile (f32, double-buffered)
            + wbuf * dp * tk * BF16      # w1 slabs (streaming)
            + 2 * 8 * tk * F32           # b1 slab (sublane-padded)
            + wbuf * tk * dp * BF16      # w2 slabs (streaming)
            + 2 * 8 * dp * F32           # b2 (resident)
            + 2 * tm * dp * out_isize    # output double buffer
            + tm * dp * F32)             # f32 accumulator scratch


# ---------------------------------------------------------------------------
# One-time parameter prep (pad to lane-dense dims, cast to MXU dtypes)
# ---------------------------------------------------------------------------
def prepare_ffn_params(w1, b1, w2, b2):
    """Pad d_model/d_ff to multiples of 128 and cast once (amortized across calls).

    PyTorch convention mapping: w1 = fc1.weight.T (d_model, d_ff), b1 = fc1.bias,
    w2 = fc2.weight.T (d_ff, d_model), b2 = fc2.bias.
    """
    d_model, d_ff = w1.shape
    dp = _round_up(d_model, 128)
    fp = _round_up(d_ff, 128)
    w1p = jnp.pad(w1, ((0, dp - d_model), (0, fp - d_ff))).astype(jnp.bfloat16)
    b1p = jnp.pad(b1, (0, fp - d_ff)).reshape(1, fp).astype(jnp.float32)
    w2p = jnp.pad(w2, ((0, fp - d_ff), (0, dp - d_model))).astype(jnp.bfloat16)
    b2p = jnp.pad(b2, (0, dp - d_model)).reshape(1, dp).astype(jnp.float32)
    return dict(w1=w1p, b1=b1p, w2=w2p, b2=b2p, d_model=d_model, d_ff=d_ff)


# ---------------------------------------------------------------------------
# Wrapper
# ---------------------------------------------------------------------------
def positionwise_ffn(x, params, *, row_tile=None, ff_tile=None):
    """y = relu(x @ w1 + b1) @ w2 + b2 applied position-wise.

    x: (batch, seq, d_model) f32 (or bf16). params: output of prepare_ffn_params.
    MXU matmuls in bf16 with f32 accumulation (~1e-2 rel. deviation vs f32 reference).
    """
    batch, seq, d_model = x.shape
    assert d_model == params["d_model"]
    w1, b1, w2, b2 = params["w1"], params["b1"], params["w2"], params["b2"]
    d_model_pad, d_ff_pad = w1.shape
    rows = batch * seq
    out_dtype = x.dtype
    out_isize = np.dtype(out_dtype).itemsize

    kind, vmem_cap, num_tc = _tpu_info()

    # ---- row tile: big enough that weight re-streaming is amortized ----
    if row_tile is None:
        row_tile = 1024 if "v6" in kind else 512   # v6e has the worst BW/FLOP ratio
    row_tile = max(16, _round_up(row_tile, 16))
    tm = row_tile if rows > row_tile else _round_up(rows, 16)

    # Guarantee >= num_tc row tiles so the "parallel" axis shards across TCs (v7x).
    for _ in range(8):
        if _round_up(rows, tm) // tm >= num_tc or tm < 32:
            break
        tm = _round_up(tm // 2, 16)

    # ---- d_ff tile candidates (d_ff_pad is a multiple of 128) ----
    tk_list = []
    if ff_tile is not None:
        t = min(_round_up(ff_tile, 128), d_ff_pad)
        if d_ff_pad % t == 0:
            tk_list.append(t)
    tk_list += [t for t in (512, 256, 128) if t <= d_ff_pad and d_ff_pad % t == 0]
    if not tk_list:
        tk_list = [d_ff_pad]

    # ---- VMEM-fit: generation-aware budget; shrink tk first, then tm ----
    budget = int(0.70 * vmem_cap)
    tm_list = [tm]
    while tm_list[-1] > 16:
        nxt = max(16, _round_up(tm_list[-1] // 2, 16))
        if nxt == tm_list[-1]:
            break
        tm_list.append(nxt)
    sel = None
    for tm_try in tm_list:
        for tk_try in tk_list:
            if _vmem_estimate(tm_try, tk_try, d_model_pad, out_isize, 2) <= budget:
                sel = (tm_try, tk_try)
                break
        if sel is not None:
            break
    if sel is None:
        sel = (tm_list[-1], tk_list[-1])
    tm, tk = sel
    rows_pad = _round_up(rows, tm)
    grid = (rows_pad // tm, d_ff_pad // tk)

    # ---- deeper buffering on streaming weight slabs (v5e/v6e, deep reduction only) ----
    wbuf = 2
    if (num_tc == 1 and grid[1] >= 3 and _supports_pipeline_mode()
            and _vmem_estimate(tm, tk, d_model_pad, out_isize, 3) <= budget):
        wbuf = 3

    est = _vmem_estimate(tm, tk, d_model_pad, out_isize, wbuf)
    vmem_limit = int(min(vmem_cap - (4 << 20), max(32 << 20, est + (8 << 20))))
    vmem_limit = max(vmem_limit, est + (2 << 20))

    # ---- x prep: reshape + zero-pad only (dtype cast happens in-kernel) ----
    x2 = x.reshape(rows, d_model)
    if rows_pad != rows or d_model_pad != d_model:
        x2 = jnp.pad(x2, ((0, rows_pad - rows), (0, d_model_pad - d_model)))

    def _w_spec(shape, index_map):
        if wbuf != 2:
            return pl.BlockSpec(shape, index_map, pipeline_mode=pl.Buffered(wbuf))
        return pl.BlockSpec(shape, index_map)

    BF16, F32 = 2, 4
    n_row_tiles = grid[0]
    cost = pl.CostEstimate(
        flops=2 * 2 * rows_pad * d_model_pad * d_ff_pad,
        transcendentals=0,
        bytes_accessed=int(
            rows_pad * d_model_pad * F32                                    # x read once
            + n_row_tiles * (w1.size * BF16 + w2.size * BF16 + b1.size * F32)  # weights re-streamed per row tile
            + b2.size * F32
            + rows_pad * d_model_pad * out_isize),                          # output
    )

    out = pl.pallas_call(
        _ffn_kernel,
        out_shape=jax.ShapeDtypeStruct((rows_pad, d_model_pad), out_dtype),
        grid_spec=pltpu.PrefetchScalarGridSpec(
            num_scalar_prefetch=0,
            grid=grid,
            in_specs=[
                pl.BlockSpec((tm, d_model_pad), lambda i, k: (i, 0)),   # x rows (f32)
                _w_spec((d_model_pad, tk), lambda i, k: (0, k)),        # w1 d_ff slab
                pl.BlockSpec((1, tk), lambda i, k: (0, k)),             # b1 d_ff slab
                _w_spec((tk, d_model_pad), lambda i, k: (k, 0)),        # w2 d_ff slab
                pl.BlockSpec((1, d_model_pad), lambda i, k: (0, 0)),    # b2 (resident)
            ],
            out_specs=pl.BlockSpec((tm, d_model_pad), lambda i, k: (i, 0)),
            scratch_shapes=[pltpu.VMEM((tm, d_model_pad), jnp.float32)],
        ),
        compiler_params=pltpu.CompilerParams(
            dimension_semantics=("parallel", "arbitrary"),
            vmem_limit_bytes=vmem_limit,
        ),
        cost_estimate=cost,
    )(x2, w1, b1, w2, b2)

    return out[:rows, :d_model].reshape(batch, seq, d_model)


# ---------------------------------------------------------------------------
# Reference + test
# ---------------------------------------------------------------------------
def _reference(x, w1, b1, w2, b2):
    h = jnp.maximum(jnp.einsum("bsd,df->bsf", x, w1) + b1, 0.0)
    return jnp.einsum("bsf,fd->bsd", h, w2) + b2


def _make_params(key, d_model, d_ff):
    k_x, k_w1, k_b1, k_w2, k_b2 = jax.random.split(key, 5)
    lim1 = 1.0 / np.sqrt(d_model)
    lim2 = 1.0 / np.sqrt(d_ff)
    w1 = jax.random.uniform(k_w1, (d_model, d_ff), jnp.float32, -lim1, lim1)
    b1 = jax.random.uniform(k_b1, (d_ff,), jnp.float32, -lim1, lim1)
    w2 = jax.random.uniform(k_w2, (d_ff, d_model), jnp.float32, -lim2, lim2)
    b2 = jax.random.uniform(k_b2, (d_model,), jnp.float32, -lim2, lim2)
    return k_x, w1, b1, w2, b2


if __name__ == "__main__":
    key = jax.random.PRNGKey(0)
    k0, k1, k2 = jax.random.split(key, 3)

    # --- primary toy config (matches the PyTorch module at small size; d_model padded 32->128) ---
    d_model, d_ff, batch, seq = 32, 64, 2, 8
    k_x, w1, b1, w2, b2 = _make_params(k0, d_model, d_ff)
    x = jax.random.normal(k_x, (batch, seq, d_model), jnp.float32)
    params = prepare_ffn_params(w1, b1, w2, b2)
    y = jax.block_until_ready(positionwise_ffn(x, params))
    np.testing.assert_allclose(np.asarray(y),
                               np.asarray(_reference(x, w1, b1, w2, b2)),
                               rtol=2e-2, atol=2e-2)

    # --- second config: odd rows + multi-step d_ff reduction ---
    d_model, d_ff, batch, seq = 32, 256, 3, 5
    k_x, w1, b1, w2, b2 = _make_params(k1, d_model, d_ff)
    x = jax.random.normal(k_x, (batch, seq, d_model), jnp.float32)
    params = prepare_ffn_params(w1, b1, w2, b2)
    y2 = jax.block_until_ready(positionwise_ffn(x, params, ff_tile=128))
    np.testing.assert_allclose(np.asarray(y2),
                               np.asarray(_reference(x, w1, b1, w2, b2)),
                               rtol=2e-2, atol=2e-2)

    # --- third config: lane-dense (no padding) path, d_model multiple of 128 ---
    d_model, d_ff, batch, seq = 128, 512, 2, 64
    k_x, w1, b1, w2, b2 = _make_params(k2, d_model, d_ff)
    x = jax.random.normal(k_x, (batch, seq, d_model), jnp.float32)
    params = prepare_ffn_params(w1, b1, w2, b2)
    y3 = jax.block_until_ready(positionwise_ffn(x, params))
    np.testing.assert_allclose(np.asarray(y3),
                               np.asarray(_reference(x, w1, b1, w2, b2)),
                               rtol=2e-2, atol=2e-2)

    print("KERNEL_OK")
</pallas_src>

<mosaic_0001>
module attributes {stable_mosaic.version = 11 : i64} {
  func.func @_ffn_kernel(%arg0: i32, %arg1: i32, %arg2: memref<16x128xf32, #tpu.memory_space<vmem>>, %arg3: memref<128x128xbf16, #tpu.memory_space<vmem>>, %arg4: memref<1x128xf32, #tpu.memory_space<vmem>>, %arg5: memref<128x128xbf16, #tpu.memory_space<vmem>>, %arg6: memref<1x128xf32, #tpu.memory_space<vmem>>, %arg7: memref<16x128xf32, #tpu.memory_space<vmem>>, %arg8: memref<16x128xf32, #tpu.memory_space<vmem>>) attributes {dimension_semantics = [#tpu.dimension_semantics<parallel>, #tpu.dimension_semantics<arbitrary>], iteration_bounds = array<i64: 1, 1>, scalar_prefetch = 0 : i64, scratch_operands = 1 : i64, tpu.core_type = #tpu.core_type<tc>, window_params = [{transform_indices = @transform_0, window_bounds = array<i64: 16, 128>}, {transform_indices = @transform_1, window_bounds = array<i64: 128, 128>}, {transform_indices = @transform_2, window_bounds = array<i64: 1, 128>}, {transform_indices = @transform_3, window_bounds = array<i64: 128, 128>}, {pipeline_mode = #tpu.pipeline_mode<synchronous>, transform_indices = @transform_4, window_bounds = array<i64: 1, 128>}, {transform_indices = @transform_5, window_bounds = array<i64: 16, 128>}]} {
    %c0_i32 = arith.constant 0 : i32
    %0 = arith.cmpi eq, %arg1, %c0_i32 : i32
    %1 = arith.extui %0 : i1 to i32
    %c0_i32_0 = arith.constant 0 : i32
    %2 = arith.cmpi ne, %1, %c0_i32_0 : i32
    scf.if %2 {
      %cst_16 = arith.constant 0.000000e+00 : f32
      %21 = vector.broadcast %cst_16 : f32 to vector<16x128xf32>
      %c0_17 = arith.constant 0 : index
      %c0_18 = arith.constant 0 : index
      %22 = vector.load %arg8[%c0_17, %c0_18] : memref<16x128xf32, #tpu.memory_space<vmem>>, vector<16x128xf32>
      tpu.vector_store %arg8[%c0_17, %c0_18], %21 {strides = array<i32>} : memref<16x128xf32, #tpu.memory_space<vmem>>, vector<16x128xf32>,
    } else {
    }
    %c0 = arith.constant 0 : index
    %c0_1 = arith.constant 0 : index
    %3 = vector.load %arg2[%c0, %c0_1] : memref<16x128xf32, #tpu.memory_space<vmem>>, vector<16x128xf32>
    %4 = arith.truncf %3 : vector<16x128xf32> to vector<16x128xbf16>
    %c0_2 = arith.constant 0 : index
    %c0_3 = arith.constant 0 : index
    %5 = vector.load %arg3[%c0_2, %c0_3] : memref<128x128xbf16, #tpu.memory_space<vmem>>, vector<128x128xbf16>
    %cst = arith.constant dense<0.000000e+00> : vector<16x128xf32>
    %6 = tpu.matmul %4, %5, %cst {dimension_numbers = #tpu.dot_dimension_numbers<[1], [0], [0], [1], [0, 0, 1, 1], [], []>} : vector<16x128xbf16>, vector<128x128xbf16>, vector<16x128xf32> -> vector<16x128xf32>
    %c0_4 = arith.constant 0 : index
    %c0_5 = arith.constant 0 : index
    %7 = vector.load %arg4[%c0_4, %c0_5] : memref<1x128xf32, #tpu.memory_space<vmem>>, vector<1x128xf32>
    %8 = vector.broadcast %7 : vector<1x128xf32> to vector<16x128xf32>
    %9 = arith.addf %6, %8 : vector<16x128xf32>
    %cst_6 = arith.constant 0.000000e+00 : f32
    %10 = vector.broadcast %cst_6 : f32 to vector<16x128xf32>
    %11 = arith.maximumf %9, %10 : vector<16x128xf32>
    %c0_7 = arith.constant 0 : index
    %c0_8 = arith.constant 0 : index
    %12 = vector.load %arg8[%c0_7, %c0_8] : memref<16x128xf32, #tpu.memory_space<vmem>>, vector<16x128xf32>
    %13 = arith.truncf %11 : vector<16x128xf32> to vector<16x128xbf16>
    %c0_9 = arith.constant 0 : index
    %c0_10 = arith.constant 0 : index
    %14 = vector.load %arg5[%c0_9, %c0_10] : memref<128x128xbf16, #tpu.memory_space<vmem>>, vector<128x128xbf16>
    %cst_11 = arith.constant dense<0.000000e+00> : vector<16x128xf32>
    %15 = tpu.matmul %13, %14, %cst_11 {dimension_numbers = #tpu.dot_dimension_numbers<[1], [0], [0], [1], [0, 0, 1, 1], [], []>} : vector<16x128xbf16>, vector<128x128xbf16>, vector<16x128xf32> -> vector<16x128xf32>
    %16 = arith.addf %12, %15 : vector<16x128xf32>
    %c0_12 = arith.constant 0 : index
    %c0_13 = arith.constant 0 : index
    %17 = vector.load %arg8[%c0_12, %c0_13] : memref<16x128xf32, #tpu.memory_space<vmem>>, vector<16x128xf32>
    tpu.vector_store %arg8[%c0_12, %c0_13], %16 {strides = array<i32>} : memref<16x128xf32, #tpu.memory_space<vmem>>, vector<16x128xf32>,
    %c0_i32_14 = arith.constant 0 : i32
    %18 = arith.cmpi eq, %arg1, %c0_i32_14 : i32
    %19 = arith.extui %18 : i1 to i32
    %c0_i32_15 = arith.constant 0 : i32
    %20 = arith.cmpi ne, %19, %c0_i32_15 : i32
    scf.if %20 {
      %c0_16 = arith.constant 0 : index
      %c0_17 = arith.constant 0 : index
      %21 = vector.load %arg8[%c0_16, %c0_17] : memref<16x128xf32, #tpu.memory_space<vmem>>, vector<16x128xf32>
      %c0_18 = arith.constant 0 : index
      %c0_19 = arith.constant 0 : index
      %22 = vector.load %arg6[%c0_18, %c0_19] : memref<1x128xf32, #tpu.memory_space<vmem>>, vector<1x128xf32>
      %23 = vector.broadcast %22 : vector<1x128xf32> to vector<16x128xf32>
      %24 = arith.addf %21, %23 : vector<16x128xf32>
      %c0_20 = arith.constant 0 : index
      %c0_21 = arith.constant 0 : index
      %25 = vector.load %arg7[%c0_20, %c0_21] : memref<16x128xf32, #tpu.memory_space<vmem>>, vector<16x128xf32>
      tpu.vector_store %arg7[%c0_20, %c0_21], %24 {strides = array<i32>} : memref<16x128xf32, #tpu.memory_space<vmem>>, vector<16x128xf32>,
    } else {
    }
    return
  }
  func.func @transform_0(%arg0: i32, %arg1: i32) -> (i32, i32) {
    %c0_i32 = arith.constant 0 : i32
    %c0_i32_0 = arith.constant 0 : i32
    return %arg0, %c0_i32 : i32, i32
  }
  func.func @transform_1(%arg0: i32, %arg1: i32) -> (i32, i32) {
    %c0_i32 = arith.constant 0 : i32
    %c0_i32_0 = arith.constant 0 : i32
    return %c0_i32, %arg1 : i32, i32
  }
  func.func @transform_2(%arg0: i32, %arg1: i32) -> (i32, i32) {
    %c0_i32 = arith.constant 0 : i32
    %c0_i32_0 = arith.constant 0 : i32
    return %c0_i32, %arg1 : i32, i32
  }
  func.func @transform_3(%arg0: i32, %arg1: i32) -> (i32, i32) {
    %c0_i32 = arith.constant 0 : i32
    %c0_i32_0 = arith.constant 0 : i32
    return %arg1, %c0_i32 : i32, i32
  }
  func.func @transform_4(%arg0: i32, %arg1: i32) -> (i32, i32) {
    %c0_i32 = arith.constant 0 : i32
    %c0_i32_0 = arith.constant 0 : i32
    %c0_i32_1 = arith.constant 0 : i32
    return %c0_i32, %c0_i32_0 : i32, i32
  }
  func.func @transform_5(%arg0: i32, %arg1: i32) -> (i32, i32) {
    %c0_i32 = arith.constant 0 : i32
    %c0_i32_0 = arith.constant 0 : i32
    return %arg0, %c0_i32 : i32, i32
  }
}

</mosaic_0001>

<bundles_post_ra>
// kernel: tpu_custom_call.1
= control target key start
LH: loop header
LB: loop body
LE: loop exit
PB: predicated region body
PF: predicated region fallthrough
CT: control target
= control target key end

     0   :  { %10 = vsyncpa [#allocation4], 0  ;;  %s533_s0 = inlined_call_operand.hbm [shape: f32[16,128], index: 0, kind: input, shape index: {}]   ;;  %s534_s1 = inlined_call_operand.hbm [shape: bf16[128,128], index: 1, kind: input, shape index: {}]   ;;  %s535_s2 = inlined_call_operand.vmem [shape: f32[1,128], index: 2, kind: input, shape index: {}]   ;;  %s536_s3 = inlined_call_operand.hbm [shape: bf16[128,128], index: 3, kind: input, shape index: {}]   ;;  %s537_s4 = inlined_call_operand.vmem [shape: f32[1,128], index: 4, kind: input, shape index: {}]   ;;  %s538_s5 = inlined_call_operand.hbm [shape: f32[16,128], index: 5, kind: output, shape index: {}]  }
   0x1   :  { %11 = vsyncpa [#allocation7], 0  ;;  %s30_s20 = sshll.u32 %s534_s1, 4  ;;  %s31_s20 = int_to_ptr.hbm [resolvable:$true] %s30_s20 }
   0x2   :  { %12 = vsyncpa [#allocation5], 0  ;;  %s471_s21 = smov [#allocation6]   ;;  %s17_s25 = sshll.u32 %s533_s0, 4  ;;  %s18_s25 = int_to_ptr.hbm [resolvable:$true] %s17_s25 }
   0x3   :  { %s32_s22 = sshll.u32 %s471_s21, 4  ;;  %s472_s26 = smov 64   ;;  %s33_s22 = int_to_ptr.vmem [resolvable:$true] %s32_s22 }
   0x4   :  { %s473_s27 = smov 4   ;;  %s474_s28 = smov [#allocation3]  }
   0x5   :  { %38 = dma.hbm_to_vmem [thread:$0]  %s31_s20, 1024, %s33_s22, [#allocation7], %s472_s26, %s472_s26, %s473_s27  }
   0x6   :  { %s19_s29 = sshll.u32 %s474_s28, 4  ;;  %s475_s30 = smov 128   ;;  %s20_s29 = int_to_ptr.vmem [resolvable:$true] %s19_s29 }
   0x7   :  { %s476_s6 = smov 8   ;;  %s45_s8 = sshll.u32 %s536_s3, 4  ;;  %s46_s8 = int_to_ptr.hbm [resolvable:$true] %s45_s8 }
   0x8   :  { %25 = dma.hbm_to_vmem [thread:$0]  %s18_s25, 256, %s20_s29, [#allocation4], %s475_s30, %s475_s30, %s476_s6  }
   0x9   :  { %s477_s9 = smov [#allocation8]  }
   0xa   :  { %s47_s0 = sshll.u32 %s477_s9, 4  ;;  %s48_s0 = int_to_ptr.vmem [resolvable:$true] %s47_s0 }
   0xb   :  { %53 = dma.hbm_to_vmem [thread:$0]  %s46_s8, 1024, %s48_s0, [#allocation7], %s472_s26, %s472_s26, %s473_s27  }
   0xc   :  { %465 = dma.done.wait [#allocation4], 256  }
   0xd   :  { %466 = vsyncadd [#allocation4], 4294967040 }
   0xe   :  { %467 = dma.done.wait [#allocation7], 2048  }
   0xf   :  { %468 = vsyncadd [#allocation7], 4294965248  ;;  %v350_v0 = vld [vmem:[#allocation6 + $0x38] sm:$0xff]  ;;  %v349_v1 = vld [vmem:[#allocation6 + $0x30] sm:$0xff]  ;;  %s478_s13 = smov [#allocation9]  }
  0x10   :  { %145 = vmatpush.bf16.msra.mxu0 %v350_v0  ;;  %v358_v2 = vld [vmem:[#allocation8 + $0x38] sm:$0xff]  ;;  %v357_v3 = vld [vmem:[#allocation8 + $0x30] sm:$0xff]  ;;  %v348_v4 = vld [vmem:[#allocation6 + $0x28] sm:$0xff]  ;;  %s263_s14 = sshll.u32 %s478_s13, 4  ;;  %s264_s14 = int_to_ptr.vmem [resolvable:$true] %s263_s14 }
  0x11   :  { %228 = vmatpush.bf16.msra.mxu1 %v358_v2  ;;  %v356_v5 = vld [vmem:[#allocation8 + $0x28] sm:$0xff]  ;;  %v347_v6 = vld [vmem:[#allocation6 + $0x20] sm:$0xff]  ;;  %v346_v8 = vld [vmem:[#allocation6 + $0x18] sm:$0xff] }
  0x12   :  { %v355_v7 = vld [vmem:[#allocation8 + $0x20] sm:$0xff]  ;;  %v345_v9 = vld [vmem:[#allocation6 + $0x10] sm:$0xff]  ;;  %v344_v10 = vld [vmem:[#allocation6 + $0x8] sm:$0xff] }
  0x13   :  { %v343_v11 = vld [vmem:[#allocation6] sm:$0xff]  ;;  %v74_v12 = vld [vmem:[#allocation3] sm:$0xff]  ;;  %v75_v13 = vld [vmem:[#allocation3 + $0x8] sm:$0xff] }
  0x14   :  { %146 = vmatpush.bf16.msra.mxu0 %v349_v1  ;;  %v76_v14 = vpack.c.bf16 %v75_v13, %v74_v12  ;;  %v354_v15 = vld [vmem:[#allocation8 + $0x18] sm:$0xff]  ;;  %v353_v16 = vld [vmem:[#allocation8 + $0x10] sm:$0xff]  ;;  %v352_v17 = vld [vmem:[#allocation8 + $0x8] sm:$0xff] }
  0x15   :  { %229 = vmatpush.bf16.msra.mxu1 %v357_v3  ;;  %v351_v18 = vld [vmem:[#allocation8] sm:$0xff]  ;;  %v367_v20 = vld [vmem:[%s535_s2] ss:$0 sm:$0xff]  ;;  %s265_s2 = sshll.u32 %s538_s5, 4  ;;  %s266_s2 = int_to_ptr.hbm [resolvable:$true] %s265_s2 }
  0x16   :  { %v368_v27 = vld [vmem:[%s537_s4] ss:$0 sm:$0xff] }
  0x18   :  { %147 = vmatpush.bf16.msra.mxu0 %v348_v4 }
  0x19   :  { %230 = vmatpush.bf16.msra.mxu1 %v356_v5 }
  0x1c   :  { %148 = vmatpush.bf16.msra.mxu0 %v347_v6 }
  0x1d   :  { %231 = vmatpush.bf16.msra.mxu1 %v355_v7 }
  0x20   :  { %149 = vmatpush.bf16.msra.mxu0 %v346_v8 }
  0x21   :  { %232 = vmatpush.bf16.msra.mxu1 %v354_v15 }
  0x24   :  { %150 = vmatpush.bf16.msra.mxu0 %v345_v9 }
  0x25   :  { %233 = vmatpush.bf16.msra.mxu1 %v353_v16 }
  0x28   :  { %151 = vmatpush.bf16.msra.mxu0 %v344_v10 }
  0x29   :  { %234 = vmatpush.bf16.msra.mxu1 %v352_v17 }
  0x2c   :  { %152 = vmatpush.bf16.msra.mxu0 %v343_v11 }
  0x2d   :  { %235 = vmatpush.bf16.msra.mxu1 %v351_v18 }
  0x2f   :  { %153 = vmatmul.bf16.vlgmr.msra.gmra.mxu0 %v76_v14 }
  0xac   :  { %v154_v19 = vpop.f32.mrf.mxu0 }
  0xad   :  { %v155_v21 = vadd.f32 %v367_v20, %v154_v19 }
  0xaf   :  { %v159_v24 = vmax.f32 %v155_v21, 0.0 }
  0xb4   :  { %v156_v22 = vpop.f32.mrf.mxu0 }
  0xb5   :  { %v157_v23 = vadd.f32 %v367_v20, %v156_v22 }
  0xb7   :  { %v160_v25 = vmax.f32 %v157_v23, 0.0 }
  0xb9   :  { %v163_v26 = vpack.c.bf16 %v160_v25, %v159_v24 }
  0xbb   :  { %236 = vmatmul.bf16.vlgmr.msra.gmra.mxu1 %v163_v26 }
 0x138   :  { %v237_v28 = vpop.f32.mrf.mxu1 }
 0x139   :  { %v255_v29 = vadd.f32 %v368_v27, %v237_v28 }
 0x13b   :  { %257 = vst [vmem:[#allocation9] sm:$0xff] %v255_v29 }
 0x140   :  { %v239_v30 = vpop.f32.mrf.mxu1 }
 0x141   :  { %v256_v31 = vadd.f32 %v368_v27, %v239_v30 }
 0x143   :  { %258 = vst [vmem:[#allocation9 + $0x8] sm:$0xff] %v256_v31 }
 0x144   :  { %271 = dma.vmem_to_hbm [thread:$0]  %s264_s14, 256, %s266_s2, [#allocation5], %s475_s30, %s475_s30, %s476_s6  }
 0x145   :  { %469 = dma.done.wait [#allocation5], 256  }
 0x146   :  { %470 = vsyncadd [#allocation5], 4294967040 }
 0x147   :  { %276 = vsyncpa [#allocation4], 1 }
 0x148   :  { %277 = vsyncpa [#allocation7], 1 }
 0x149   :  { %278 = vsyncpa [#allocation5], 1 }

</bundles_post_ra>
